<compile_context>
chip_gen: v5e
topology: v5e:2x2
jax: 0.10.0
libtpu: 0.0.40
codegen_flags: <defaults>
</compile_context>

<pallas_src>
import functools
import math

import jax
import jax.numpy as jnp
import numpy as np
from jax.experimental import pallas as pl
from jax.experimental.pallas import tpu as pltpu

GN_EPS = 1e-5            # torch.nn.GroupNorm default eps
XPOS_SCALE_BASE = 512.0  # torchscale XPOS default


# ----------------------------------------------------------------------------
# host-side constant tables
# ----------------------------------------------------------------------------
def _xpos_tables(seq_len, d_model):
    """cos/sin tables (XPOS scale folded in), duplicate-interleaved to [S, D]."""
    half = d_model // 2
    scale = (np.arange(0, d_model, 2, dtype=np.float64) + 0.4 * d_model) / (1.4 * d_model)
    min_pos = -((seq_len + 1) // 2)                       # == -(seq_len) // 2 in python
    pos = np.arange(min_pos, seq_len + min_pos, dtype=np.float64)
    scale_mat = scale[None, :] ** (pos[:, None] / XPOS_SCALE_BASE)        # [S, half]
    inv_freq = 1.0 / (10000.0 ** (np.arange(half, dtype=np.float64) / half))
    sinusoid = np.arange(seq_len, dtype=np.float64)[:, None] * inv_freq[None, :]
    cos_t = np.repeat(np.cos(sinusoid) * scale_mat, 2, axis=1)            # duplicate_interleave
    sin_t = np.repeat(np.sin(sinusoid) * scale_mat, 2, axis=1)
    return cos_t.astype(np.float32), sin_t.astype(np.float32)


def _decay_tables(seq_len, d_k, head_num):
    """D.transpose(-2,-1) of MultiheadAttn._get_D, stacked over heads: [H, S, d_k]."""
    gammas = 1.0 - np.exp(np.linspace(math.log(1.0 / 32.0), math.log(1.0 / 512.0), head_num))
    t = np.arange(seq_len, dtype=np.float64)[:, None]     # m (sequence index)
    j = np.arange(d_k, dtype=np.float64)[None, :]         # n (d_k index)
    mats = []
    for g in gammas:
        m = np.where(j >= t, np.power(float(g), j - t), 0.0)
        mats.append(np.nan_to_num(m))                     # mirrors D[D != D] = 0
    return np.stack(mats, axis=0).astype(np.float32)


def _rotate_cols(w):
    """Exact column form of rotate_every_two: returns w @ R (signed pair swap)."""
    out = jnp.zeros_like(w)
    out = out.at[:, 0::2].set(-w[:, 1::2])
    out = out.at[:, 1::2].set(w[:, 0::2])
    return out


# ----------------------------------------------------------------------------
# fused kernel
# ----------------------------------------------------------------------------
def _mha_kernel(xin_ref, wbig_ref, wx_ref, bx_ref, cos_ref, sin_ref, ddec_ref,
                gmat_ref, gnw_ref, gnb_ref, wot_ref, o_ref,
                *, seq_len, d_model, head_num, batch_tile):
    S, D, H = seq_len, d_model, head_num
    dk = D // H
    f32 = jnp.float32

    # ---- fused projections: [Q, Q_rot, K, K_rot, V, G] in one wide matmul ----
    x = xin_ref[...].astype(f32)                                     # [bt*S, 3D]
    proj = jnp.dot(x, wbig_ref[...], preferred_element_type=f32)     # [bt*S, 6D]

    cos = cos_ref[...]
    sin = sin_ref[...]
    q_x = proj[:, 0 * D:1 * D] * cos + proj[:, 1 * D:2 * D] * sin    # xpos(w_q q)
    k_x = proj[:, 2 * D:3 * D] * cos + proj[:, 3 * D:4 * D] * sin    # xpos(w_k k)
    v_p = proj[:, 4 * D:5 * D]                                       # w_v v
    gate = proj[:, 5 * D:6 * D]                                      # w_g q

    wx = wx_ref[...]                                                 # [dk, S]
    bx = bx_ref[...]                                                 # [1, dk]
    ddec = ddec_ref[...]                                             # [bt*S, D]

    # ---- retention: per sequence in the tile, per head (small static loops) ----
    y_rows = []
    for b in range(batch_tile):
        rs = slice(b * S, (b + 1) * S)
        q_s, k_s, v_s, d_s = q_x[rs, :], k_x[rs, :], v_p[rs, :], ddec[rs, :]
        # Linformer projection of K/V over the sequence axis, all heads at once:
        #   wxk[:, h*dk:(h+1)*dk] == Wx @ K_h == (K_h^T @ Wx^T)^T   (no transposes needed)
        wxk = jnp.dot(wx, k_s, preferred_element_type=f32)           # [dk, D]
        wxv = jnp.dot(wx, v_s, preferred_element_type=f32)           # [dk, D]
        head_outs = []
        for h in range(H):
            cs = slice(h * dk, (h + 1) * dk)
            q_h = q_s[:, cs]                                         # [S, dk]
            # s = Q_h @ (K_h^T Wx^T + bx) = Q_h . wxk_h^T + rowsum(Q_h) * bx
            s = jax.lax.dot_general(
                q_h, wxk[:, cs],
                dimension_numbers=(((1,), (1,)), ((), ())),          # "NT" form
                preferred_element_type=f32)                          # [S, dk]
            s = (s + jnp.sum(q_h, axis=-1, keepdims=True) * bx) * d_s[:, cs]
            # softmax over the d_k axis (zeros stay zeros, matching torch)
            s = s - jnp.max(s, axis=-1, keepdims=True)
            e = jnp.exp(s)
            p = e * pl.reciprocal(jnp.sum(e, axis=-1, keepdims=True), approx=False)
            # y_h = p @ Vp^T = p @ (Wx V_h) + (p . bx)
            y_h = jnp.dot(p, wxv[:, cs], preferred_element_type=f32)
            y_h = y_h + jnp.sum(p * bx, axis=-1, keepdims=True)
            head_outs.append(y_h)
        y_rows.append(jnp.concatenate(head_outs, axis=-1))           # [S, D]
    y = y_rows[0] if batch_tile == 1 else jnp.concatenate(y_rows, axis=0)

    # ---- GroupNorm(head_num, d_k) over flattened (token, head) rows ----------
    # groups are runs of d_k/head_num consecutive lanes; per-group mean/var via
    # a block-diagonal averaging matmul (no lane reshapes); rsqrt -> EUP.
    gmat = gmat_ref[...]                                             # [D, D]
    mean = jnp.dot(y, gmat, preferred_element_type=f32)
    cent = y - mean
    var = jnp.dot(cent * cent, gmat, preferred_element_type=f32)
    y = cent * jax.lax.rsqrt(var + GN_EPS) * gnw_ref[...] + gnb_ref[...]

    # ---- gated swish + output projection -------------------------------------
    z = gate * y
    sw = z * (1.0 / (1.0 + jnp.exp(-z)))
    o_ref[...] = jnp.dot(sw, wot_ref[...], preferred_element_type=f32).astype(o_ref.dtype)


# ----------------------------------------------------------------------------
# wrapper
# ----------------------------------------------------------------------------
def multihead_attn_forward(q, k, v, params, *, head_num, batch_tile=1):
    """q, k, v: [B, S, d_model] float32.  params holds torch-layout weights."""
    B, S, D = q.shape
    H = head_num
    assert D % H == 0
    dk = D // H
    assert dk % H == 0, "GroupNorm(head_num, d_k) requires d_k % head_num == 0"
    assert B % batch_tile == 0
    rows = batch_tile * S
    assert rows % 8 == 0 or rows == B * S, "row tile must be sublane aligned"
    # TODO(synk): pad the batch up to a multiple of batch_tile for awkward B
    # instead of asserting.

    f32 = jnp.float32
    wq_t, wk_t, wv_t = params["wq"].T, params["wk"].T, params["wv"].T
    wg_t, wo_t = params["wg"].T, params["wo"].T
    zero = jnp.zeros((D, D), f32)
    # [q | k | v] @ Wbig  ->  [Q | Q_rot | K | K_rot | V | G]   (lane-dense: 6*D cols)
    wbig = jnp.concatenate([
        jnp.concatenate([wq_t, _rotate_cols(wq_t), zero, zero, zero, wg_t], axis=1),
        jnp.concatenate([zero, zero, wk_t, _rotate_cols(wk_t), zero, zero], axis=1),
        jnp.concatenate([zero, zero, zero, zero, wv_t, zero], axis=1),
    ], axis=0).astype(f32)                                           # [3D, 6D]

    cos_t, sin_t = _xpos_tables(S, D)                                # [S, D]
    ddec = _decay_tables(S, dk, H)                                   # [H, S, dk]
    ddec2d = np.transpose(ddec, (1, 0, 2)).reshape(S, D)             # [S, H*dk]

    gs = dk // H
    gmat = np.kron(np.eye(D // gs, dtype=np.float32),
                   np.full((gs, gs), 1.0 / gs, dtype=np.float32))    # [D, D]

    xin = jnp.concatenate([q, k, v], axis=-1).reshape(B * S, 3 * D).astype(f32)

    def tile_rows(a):
        return jnp.asarray(np.tile(a, (batch_tile, 1)))
    cos_tt, sin_tt, ddec_tt = tile_rows(cos_t), tile_rows(sin_t), tile_rows(ddec2d)

    gnw2d = jnp.tile(params["gn_w"].astype(f32), H).reshape(1, D)
    gnb2d = jnp.tile(params["gn_b"].astype(f32), H).reshape(1, D)
    bx2d = params["bx"].astype(f32).reshape(1, dk)

    kernel = functools.partial(_mha_kernel, seq_len=S, d_model=D,
                               head_num=H, batch_tile=batch_tile)
    const = lambda i: (0, 0)
    out2d = pl.pallas_call(
        kernel,
        out_shape=jax.ShapeDtypeStruct((B * S, D), q.dtype),
        grid_spec=pltpu.PrefetchScalarGridSpec(
            num_scalar_prefetch=0,
            grid=(B // batch_tile,),
            in_specs=[
                pl.BlockSpec((rows, 3 * D), lambda i: (i, 0)),   # [q|k|v] row slab
                pl.BlockSpec((3 * D, 6 * D), const),             # fused projection weight
                pl.BlockSpec((dk, S), const),                    # Wx (get_EF weight)
                pl.BlockSpec((1, dk), const),                    # Wx bias
                pl.BlockSpec((rows, D), const),                  # xpos cos (row-tiled)
                pl.BlockSpec((rows, D), const),                  # xpos sin (row-tiled)
                pl.BlockSpec((rows, D), const),                  # decay D^T (row-tiled)
                pl.BlockSpec((D, D), const),                     # group-norm averaging matrix
                pl.BlockSpec((1, D), const),                     # group-norm weight (tiled per head)
                pl.BlockSpec((1, D), const),                     # group-norm bias  (tiled per head)
                pl.BlockSpec((D, D), const),                     # W_o^T
            ],
            out_specs=pl.BlockSpec((rows, D), lambda i: (i, 0)),
        ),
        compiler_params=pltpu.CompilerParams(
            dimension_semantics=("parallel",)),
    )(xin, wbig, params["wx"].astype(f32), bx2d, cos_tt, sin_tt, ddec_tt,
      jnp.asarray(gmat), gnw2d, gnb2d, wo_t.astype(f32))
    return out2d.reshape(B, S, D)


# ----------------------------------------------------------------------------
# pure-JAX reference (mirrors the PyTorch forward)
# ----------------------------------------------------------------------------
def _reference(q, k, v, params, *, head_num):
    B, S, D = q.shape
    H = head_num
    dk = D // H
    hp = jax.lax.Precision.HIGHEST
    cos_t, sin_t = map(jnp.asarray, _xpos_tables(S, D))

    def rot2(x):
        return jnp.stack([-x[..., 1::2], x[..., 0::2]], axis=-1).reshape(x.shape)

    def lin(x, w):                                   # nn.Linear(bias=False): x @ W^T
        return jnp.einsum("bsd,ed->bse", x, w, precision=hp)

    query = lin(q, params["wq"])
    key = lin(k, params["wk"])
    value = lin(v, params["wv"])
    query = query * cos_t + rot2(query) * sin_t
    key = key * cos_t + rot2(key) * sin_t

    qh = query.reshape(B, S, H, dk).transpose(0, 2, 1, 3)
    kh = key.reshape(B, S, H, dk).transpose(0, 2, 1, 3)
    vh = value.reshape(B, S, H, dk).transpose(0, 2, 1, 3)

    kp = jnp.einsum("bhas,js->bhaj", kh.transpose(0, 1, 3, 2), params["wx"],
                    precision=hp) + params["bx"]
    vp = jnp.einsum("bhas,js->bhaj", vh.transpose(0, 1, 3, 2), params["wx"],
                    precision=hp) + params["bx"]

    dmat = jnp.asarray(_decay_tables(S, dk, H))                      # [H, S, dk]
    sco = jnp.einsum("bhsa,bhaj->bhsj", qh, kp, precision=hp) * dmat[None]
    w = jax.nn.softmax(sco, axis=-1)
    y = jnp.einsum("bhsj,bhaj->bhsa", w, vp, precision=hp)           # ret @ Vp^T
    y = y.transpose(0, 2, 1, 3).reshape(B, S, D)

    gs = dk // H
    yg = y.reshape(-1, dk).reshape(-1, H, gs)
    mean = yg.mean(axis=-1, keepdims=True)
    var = ((yg - mean) ** 2).mean(axis=-1, keepdims=True)            # biased var
    yn = (yg - mean) / jnp.sqrt(var + GN_EPS)
    yn = yn.reshape(-1, dk) * params["gn_w"] + params["gn_b"]
    y = yn.reshape(B, S, D)

    g = lin(q, params["wg"])
    z = g * y
    sw = z * (1.0 / (1.0 + jnp.exp(-z)))
    return jnp.einsum("bse,fe->bsf", sw, params["wo"], precision=hp)


if __name__ == "__main__":
    # d_model=32, head_num=2 -> d_k=16 (d_k % head_num == 0, required by GroupNorm)
    B, S, D, H = 2, 8, 32, 2
    dk = D // H
    # dropout=0.1 in the module is never applied in forward -> omitted.

    key = jax.random.PRNGKey(0)
    ks = jax.random.split(key, 10)
    lim = 1.0 / math.sqrt(D)
    params = {
        "wq": jax.random.uniform(ks[0], (D, D), jnp.float32, -lim, lim),
        "wk": jax.random.uniform(ks[1], (D, D), jnp.float32, -lim, lim),
        "wv": jax.random.uniform(ks[2], (D, D), jnp.float32, -lim, lim),
        "wg": jax.random.uniform(ks[3], (D, D), jnp.float32, -lim, lim),
        "wo": jax.random.uniform(ks[4], (D, D), jnp.float32, -lim, lim),
        # get_EF: Linear(S, d_k) with xavier-normal weight, materialized once.
        "wx": jax.random.normal(ks[5], (dk, S), jnp.float32) * math.sqrt(2.0 / (S + dk)),
        "bx": jax.random.uniform(ks[6], (dk,), jnp.float32,
                                 -1.0 / math.sqrt(S), 1.0 / math.sqrt(S)),
        "gn_w": jnp.ones((dk,), jnp.float32),   # GroupNorm affine init
        "gn_b": jnp.zeros((dk,), jnp.float32),
    }
    q = jax.random.normal(ks[7], (B, S, D), jnp.float32)
    k = jax.random.normal(ks[8], (B, S, D), jnp.float32)
    v = jax.random.normal(ks[9], (B, S, D), jnp.float32)

    out = multihead_attn_forward(q, k, v, params, head_num=H, batch_tile=1)
    out = jax.block_until_ready(out)

    ref = _reference(q, k, v, params, head_num=H)
    # tolerance accommodates MXU f32 multi-pass vs XLA HIGHEST rounding differences
    if not np.allclose(np.asarray(out), np.asarray(ref), atol=1e-2, rtol=1e-2):
        raise AssertionError("Pallas MultiheadAttn kernel mismatch vs reference")
    print("KERNEL_OK")
</pallas_src>

<mosaic_0001>
module attributes {stable_mosaic.version = 11 : i64} {
  func.func @_mha_kernel(%arg0: i32, %arg1: memref<8x96xf32, #tpu.memory_space<vmem>>, %arg2: memref<96x192xf32, #tpu.memory_space<vmem>>, %arg3: memref<16x8xf32, #tpu.memory_space<vmem>>, %arg4: memref<1x16xf32, #tpu.memory_space<vmem>>, %arg5: memref<8x32xf32, #tpu.memory_space<vmem>>, %arg6: memref<8x32xf32, #tpu.memory_space<vmem>>, %arg7: memref<8x32xf32, #tpu.memory_space<vmem>>, %arg8: memref<32x32xf32, #tpu.memory_space<vmem>>, %arg9: memref<1x32xf32, #tpu.memory_space<vmem>>, %arg10: memref<1x32xf32, #tpu.memory_space<vmem>>, %arg11: memref<32x32xf32, #tpu.memory_space<vmem>>, %arg12: memref<8x32xf32, #tpu.memory_space<vmem>>) attributes {dimension_semantics = [#tpu.dimension_semantics<parallel>], iteration_bounds = array<i64: 2>, scalar_prefetch = 0 : i64, scratch_operands = 0 : i64, tpu.core_type = #tpu.core_type<tc>, window_params = [{transform_indices = @transform_0, window_bounds = array<i64: 8, 96>}, {pipeline_mode = #tpu.pipeline_mode<synchronous>, transform_indices = @transform_1, window_bounds = array<i64: 96, 192>}, {pipeline_mode = #tpu.pipeline_mode<synchronous>, transform_indices = @transform_2, window_bounds = array<i64: 16, 8>}, {pipeline_mode = #tpu.pipeline_mode<synchronous>, transform_indices = @transform_3, window_bounds = array<i64: 1, 16>}, {pipeline_mode = #tpu.pipeline_mode<synchronous>, transform_indices = @transform_4, window_bounds = array<i64: 8, 32>}, {pipeline_mode = #tpu.pipeline_mode<synchronous>, transform_indices = @transform_5, window_bounds = array<i64: 8, 32>}, {pipeline_mode = #tpu.pipeline_mode<synchronous>, transform_indices = @transform_6, window_bounds = array<i64: 8, 32>}, {pipeline_mode = #tpu.pipeline_mode<synchronous>, transform_indices = @transform_7, window_bounds = array<i64: 32, 32>}, {pipeline_mode = #tpu.pipeline_mode<synchronous>, transform_indices = @transform_8, window_bounds = array<i64: 1, 32>}, {pipeline_mode = #tpu.pipeline_mode<synchronous>, transform_indices = @transform_9, window_bounds = array<i64: 1, 32>}, {pipeline_mode = #tpu.pipeline_mode<synchronous>, transform_indices = @transform_10, window_bounds = array<i64: 32, 32>}, {transform_indices = @transform_11, window_bounds = array<i64: 8, 32>}]} {
    %c0 = arith.constant 0 : index
    %c0_0 = arith.constant 0 : index
    %0 = vector.load %arg1[%c0, %c0_0] : memref<8x96xf32, #tpu.memory_space<vmem>>, vector<8x96xf32>
    %c0_1 = arith.constant 0 : index
    %c0_2 = arith.constant 0 : index
    %1 = vector.load %arg2[%c0_1, %c0_2] : memref<96x192xf32, #tpu.memory_space<vmem>>, vector<96x192xf32>
    %cst = arith.constant dense<0.000000e+00> : vector<8x192xf32>
    %2 = tpu.matmul %0, %1, %cst {dimension_numbers = #tpu.dot_dimension_numbers<[1], [0], [0], [1], [0, 0, 1, 1], [], []>} : vector<8x96xf32>, vector<96x192xf32>, vector<8x192xf32> -> vector<8x192xf32>
    %c0_3 = arith.constant 0 : index
    %c0_4 = arith.constant 0 : index
    %3 = vector.load %arg5[%c0_3, %c0_4] : memref<8x32xf32, #tpu.memory_space<vmem>>, vector<8x32xf32>
    %c0_5 = arith.constant 0 : index
    %c0_6 = arith.constant 0 : index
    %4 = vector.load %arg6[%c0_5, %c0_6] : memref<8x32xf32, #tpu.memory_space<vmem>>, vector<8x32xf32>
    %5 = vector.extract_strided_slice %2 {offsets = [0, 0], sizes = [8, 32], strides = [1, 1]} : vector<8x192xf32> to vector<8x32xf32>
    %6 = arith.mulf %5, %3 : vector<8x32xf32>
    %7 = vector.extract_strided_slice %2 {offsets = [0, 32], sizes = [8, 32], strides = [1, 1]} : vector<8x192xf32> to vector<8x32xf32>
    %8 = arith.mulf %7, %4 : vector<8x32xf32>
    %9 = arith.addf %6, %8 : vector<8x32xf32>
    %10 = vector.extract_strided_slice %2 {offsets = [0, 64], sizes = [8, 32], strides = [1, 1]} : vector<8x192xf32> to vector<8x32xf32>
    %11 = arith.mulf %10, %3 : vector<8x32xf32>
    %12 = vector.extract_strided_slice %2 {offsets = [0, 96], sizes = [8, 32], strides = [1, 1]} : vector<8x192xf32> to vector<8x32xf32>
    %13 = arith.mulf %12, %4 : vector<8x32xf32>
    %14 = arith.addf %11, %13 : vector<8x32xf32>
    %15 = vector.extract_strided_slice %2 {offsets = [0, 128], sizes = [8, 32], strides = [1, 1]} : vector<8x192xf32> to vector<8x32xf32>
    %16 = vector.extract_strided_slice %2 {offsets = [0, 160], sizes = [8, 32], strides = [1, 1]} : vector<8x192xf32> to vector<8x32xf32>
    %c0_7 = arith.constant 0 : index
    %c0_8 = arith.constant 0 : index
    %17 = vector.load %arg3[%c0_7, %c0_8] : memref<16x8xf32, #tpu.memory_space<vmem>>, vector<16x8xf32>
    %c0_9 = arith.constant 0 : index
    %c0_10 = arith.constant 0 : index
    %18 = vector.load %arg4[%c0_9, %c0_10] : memref<1x16xf32, #tpu.memory_space<vmem>>, vector<1x16xf32>
    %c0_11 = arith.constant 0 : index
    %c0_12 = arith.constant 0 : index
    %19 = vector.load %arg7[%c0_11, %c0_12] : memref<8x32xf32, #tpu.memory_space<vmem>>, vector<8x32xf32>
    %cst_13 = arith.constant dense<0.000000e+00> : vector<16x32xf32>
    %20 = tpu.matmul %17, %14, %cst_13 {dimension_numbers = #tpu.dot_dimension_numbers<[1], [0], [0], [1], [0, 0, 1, 1], [], []>} : vector<16x8xf32>, vector<8x32xf32>, vector<16x32xf32> -> vector<16x32xf32>
    %cst_14 = arith.constant dense<0.000000e+00> : vector<16x32xf32>
    %21 = tpu.matmul %17, %15, %cst_14 {dimension_numbers = #tpu.dot_dimension_numbers<[1], [0], [0], [1], [0, 0, 1, 1], [], []>} : vector<16x8xf32>, vector<8x32xf32>, vector<16x32xf32> -> vector<16x32xf32>
    %22 = vector.extract_strided_slice %9 {offsets = [0, 0], sizes = [8, 16], strides = [1, 1]} : vector<8x32xf32> to vector<8x16xf32>
    %23 = vector.extract_strided_slice %20 {offsets = [0, 0], sizes = [16, 16], strides = [1, 1]} : vector<16x32xf32> to vector<16x16xf32>
    %cst_15 = arith.constant dense<0.000000e+00> : vector<8x16xf32>
    %24 = tpu.matmul %22, %23, %cst_15 {dimension_numbers = #tpu.dot_dimension_numbers<[1], [1], [0], [0], [0, 0, 1, 0], [], []>} : vector<8x16xf32>, vector<16x16xf32>, vector<8x16xf32> -> vector<8x16xf32>
    %cst_16 = arith.constant dense<0.000000e+00> : vector<8xf32>
    %25 = vector.multi_reduction <add>, %22, %cst_16 [1] : vector<8x16xf32> to vector<8xf32>
    %26 = vector.shape_cast %25 : vector<8xf32> to vector<8x1xf32>
    %27 = vector.broadcast %26 : vector<8x1xf32> to vector<8x16xf32>
    %28 = vector.broadcast %18 : vector<1x16xf32> to vector<8x16xf32>
    %29 = arith.mulf %27, %28 : vector<8x16xf32>
    %30 = arith.addf %24, %29 : vector<8x16xf32>
    %31 = vector.extract_strided_slice %19 {offsets = [0, 0], sizes = [8, 16], strides = [1, 1]} : vector<8x32xf32> to vector<8x16xf32>
    %32 = arith.mulf %30, %31 : vector<8x16xf32>
    %cst_17 = arith.constant dense<0xFF800000> : vector<8xf32>
    %33 = vector.multi_reduction <maximumf>, %32, %cst_17 [1] : vector<8x16xf32> to vector<8xf32>
    %34 = vector.shape_cast %33 : vector<8xf32> to vector<8x1xf32>
    %35 = vector.broadcast %34 : vector<8x1xf32> to vector<8x16xf32>
    %36 = arith.subf %32, %35 : vector<8x16xf32>
    %37 = math.exp %36 : vector<8x16xf32>
    %cst_18 = arith.constant dense<0.000000e+00> : vector<8xf32>
    %38 = vector.multi_reduction <add>, %37, %cst_18 [1] : vector<8x16xf32> to vector<8xf32>
    %39 = vector.shape_cast %38 : vector<8xf32> to vector<8x1xf32>
    %40 = tpu.reciprocal %39 : vector<8x1xf32> -> vector<8x1xf32>
    %41 = vector.broadcast %40 : vector<8x1xf32> to vector<8x16xf32>
    %42 = arith.mulf %37, %41 : vector<8x16xf32>
    %43 = vector.extract_strided_slice %21 {offsets = [0, 0], sizes = [16, 16], strides = [1, 1]} : vector<16x32xf32> to vector<16x16xf32>
    %cst_19 = arith.constant dense<0.000000e+00> : vector<8x16xf32>
    %44 = tpu.matmul %42, %43, %cst_19 {dimension_numbers = #tpu.dot_dimension_numbers<[1], [0], [0], [1], [0, 0, 1, 1], [], []>} : vector<8x16xf32>, vector<16x16xf32>, vector<8x16xf32> -> vector<8x16xf32>
    %45 = vector.broadcast %18 : vector<1x16xf32> to vector<8x16xf32>
    %46 = arith.mulf %42, %45 : vector<8x16xf32>
    %cst_20 = arith.constant dense<0.000000e+00> : vector<8xf32>
    %47 = vector.multi_reduction <add>, %46, %cst_20 [1] : vector<8x16xf32> to vector<8xf32>
    %48 = vector.shape_cast %47 : vector<8xf32> to vector<8x1xf32>
    %49 = vector.broadcast %48 : vector<8x1xf32> to vector<8x16xf32>
    %50 = arith.addf %44, %49 : vector<8x16xf32>
    %51 = vector.extract_strided_slice %9 {offsets = [0, 16], sizes = [8, 16], strides = [1, 1]} : vector<8x32xf32> to vector<8x16xf32>
    %52 = vector.extract_strided_slice %20 {offsets = [0, 16], sizes = [16, 16], strides = [1, 1]} : vector<16x32xf32> to vector<16x16xf32>
    %cst_21 = arith.constant dense<0.000000e+00> : vector<8x16xf32>
    %53 = tpu.matmul %51, %52, %cst_21 {dimension_numbers = #tpu.dot_dimension_numbers<[1], [1], [0], [0], [0, 0, 1, 0], [], []>} : vector<8x16xf32>, vector<16x16xf32>, vector<8x16xf32> -> vector<8x16xf32>
    %cst_22 = arith.constant dense<0.000000e+00> : vector<8xf32>
    %54 = vector.multi_reduction <add>, %51, %cst_22 [1] : vector<8x16xf32> to vector<8xf32>
    %55 = vector.shape_cast %54 : vector<8xf32> to vector<8x1xf32>
    %56 = vector.broadcast %55 : vector<8x1xf32> to vector<8x16xf32>
    %57 = vector.broadcast %18 : vector<1x16xf32> to vector<8x16xf32>
    %58 = arith.mulf %56, %57 : vector<8x16xf32>
    %59 = arith.addf %53, %58 : vector<8x16xf32>
    %60 = vector.extract_strided_slice %19 {offsets = [0, 16], sizes = [8, 16], strides = [1, 1]} : vector<8x32xf32> to vector<8x16xf32>
    %61 = arith.mulf %59, %60 : vector<8x16xf32>
    %cst_23 = arith.constant dense<0xFF800000> : vector<8xf32>
    %62 = vector.multi_reduction <maximumf>, %61, %cst_23 [1] : vector<8x16xf32> to vector<8xf32>
    %63 = vector.shape_cast %62 : vector<8xf32> to vector<8x1xf32>
    %64 = vector.broadcast %63 : vector<8x1xf32> to vector<8x16xf32>
    %65 = arith.subf %61, %64 : vector<8x16xf32>
    %66 = math.exp %65 : vector<8x16xf32>
    %cst_24 = arith.constant dense<0.000000e+00> : vector<8xf32>
    %67 = vector.multi_reduction <add>, %66, %cst_24 [1] : vector<8x16xf32> to vector<8xf32>
    %68 = vector.shape_cast %67 : vector<8xf32> to vector<8x1xf32>
    %69 = tpu.reciprocal %68 : vector<8x1xf32> -> vector<8x1xf32>
    %70 = vector.broadcast %69 : vector<8x1xf32> to vector<8x16xf32>
    %71 = arith.mulf %66, %70 : vector<8x16xf32>
    %72 = vector.extract_strided_slice %21 {offsets = [0, 16], sizes = [16, 16], strides = [1, 1]} : vector<16x32xf32> to vector<16x16xf32>
    %cst_25 = arith.constant dense<0.000000e+00> : vector<8x16xf32>
    %73 = tpu.matmul %71, %72, %cst_25 {dimension_numbers = #tpu.dot_dimension_numbers<[1], [0], [0], [1], [0, 0, 1, 1], [], []>} : vector<8x16xf32>, vector<16x16xf32>, vector<8x16xf32> -> vector<8x16xf32>
    %74 = vector.broadcast %18 : vector<1x16xf32> to vector<8x16xf32>
    %75 = arith.mulf %71, %74 : vector<8x16xf32>
    %cst_26 = arith.constant dense<0.000000e+00> : vector<8xf32>
    %76 = vector.multi_reduction <add>, %75, %cst_26 [1] : vector<8x16xf32> to vector<8xf32>
    %77 = vector.shape_cast %76 : vector<8xf32> to vector<8x1xf32>
    %78 = vector.broadcast %77 : vector<8x1xf32> to vector<8x16xf32>
    %79 = arith.addf %73, %78 : vector<8x16xf32>
    %80 = tpu.concatenate %50, %79 in 1 : vector<8x16xf32>, vector<8x16xf32> -> vector<8x32xf32>
    %c0_27 = arith.constant 0 : index
    %c0_28 = arith.constant 0 : index
    %81 = vector.load %arg8[%c0_27, %c0_28] : memref<32x32xf32, #tpu.memory_space<vmem>>, vector<32x32xf32>
    %cst_29 = arith.constant dense<0.000000e+00> : vector<8x32xf32>
    %82 = tpu.matmul %80, %81, %cst_29 {dimension_numbers = #tpu.dot_dimension_numbers<[1], [0], [0], [1], [0, 0, 1, 1], [], []>} : vector<8x32xf32>, vector<32x32xf32>, vector<8x32xf32> -> vector<8x32xf32>
    %83 = arith.subf %80, %82 : vector<8x32xf32>
    %84 = arith.mulf %83, %83 : vector<8x32xf32>
    %cst_30 = arith.constant dense<0.000000e+00> : vector<8x32xf32>
    %85 = tpu.matmul %84, %81, %cst_30 {dimension_numbers = #tpu.dot_dimension_numbers<[1], [0], [0], [1], [0, 0, 1, 1], [], []>} : vector<8x32xf32>, vector<32x32xf32>, vector<8x32xf32> -> vector<8x32xf32>
    %cst_31 = arith.constant 9.99999974E-6 : f32
    %86 = vector.broadcast %cst_31 : f32 to vector<8x32xf32>
    %87 = arith.addf %85, %86 : vector<8x32xf32>
    %88 = math.rsqrt %87 : vector<8x32xf32>
    %89 = arith.mulf %83, %88 : vector<8x32xf32>
    %c0_32 = arith.constant 0 : index
    %c0_33 = arith.constant 0 : index
    %90 = vector.load %arg9[%c0_32, %c0_33] : memref<1x32xf32, #tpu.memory_space<vmem>>, vector<1x32xf32>
    %91 = vector.broadcast %90 : vector<1x32xf32> to vector<8x32xf32>
    %92 = arith.mulf %89, %91 : vector<8x32xf32>
    %c0_34 = arith.constant 0 : index
    %c0_35 = arith.constant 0 : index
    %93 = vector.load %arg10[%c0_34, %c0_35] : memref<1x32xf32, #tpu.memory_space<vmem>>, vector<1x32xf32>
    %94 = vector.broadcast %93 : vector<1x32xf32> to vector<8x32xf32>
    %95 = arith.addf %92, %94 : vector<8x32xf32>
    %96 = arith.mulf %16, %95 : vector<8x32xf32>
    %cst_36 = arith.constant 0.000000e+00 : f32
    %97 = vector.broadcast %cst_36 : f32 to vector<8x32xf32>
    %98 = arith.subf %97, %96 : vector<8x32xf32>
    %99 = math.exp %98 : vector<8x32xf32>
    %cst_37 = arith.constant 1.000000e+00 : f32
    %100 = vector.broadcast %cst_37 : f32 to vector<8x32xf32>
    %101 = arith.addf %100, %99 : vector<8x32xf32>
    %cst_38 = arith.constant 1.000000e+00 : f32
    %102 = vector.broadcast %cst_38 : f32 to vector<8x32xf32>
    %103 = arith.divf %102, %101 : vector<8x32xf32>
    %104 = arith.mulf %96, %103 : vector<8x32xf32>
    %c0_39 = arith.constant 0 : index
    %c0_40 = arith.constant 0 : index
    %105 = vector.load %arg11[%c0_39, %c0_40] : memref<32x32xf32, #tpu.memory_space<vmem>>, vector<32x32xf32>
    %cst_41 = arith.constant dense<0.000000e+00> : vector<8x32xf32>
    %106 = tpu.matmul %104, %105, %cst_41 {dimension_numbers = #tpu.dot_dimension_numbers<[1], [0], [0], [1], [0, 0, 1, 1], [], []>} : vector<8x32xf32>, vector<32x32xf32>, vector<8x32xf32> -> vector<8x32xf32>
    %c0_42 = arith.constant 0 : index
    %c0_43 = arith.constant 0 : index
    %107 = vector.load %arg12[%c0_42, %c0_43] : memref<8x32xf32, #tpu.memory_space<vmem>>, vector<8x32xf32>
    tpu.vector_store %arg12[%c0_42, %c0_43], %106 {strides = array<i32>} : memref<8x32xf32, #tpu.memory_space<vmem>>, vector<8x32xf32>,
    return
  }
  func.func @transform_0(%arg0: i32) -> (i32, i32) {
    %c0_i32 = arith.constant 0 : i32
    %c0_i32_0 = arith.constant 0 : i32
    return %arg0, %c0_i32 : i32, i32
  }
  func.func @transform_1(%arg0: i32) -> (i32, i32) {
    %c0_i32 = arith.constant 0 : i32
    %c0_i32_0 = arith.constant 0 : i32
    %c0_i32_1 = arith.constant 0 : i32
    return %c0_i32, %c0_i32_0 : i32, i32
  }
  func.func @transform_2(%arg0: i32) -> (i32, i32) {
    %c0_i32 = arith.constant 0 : i32
    %c0_i32_0 = arith.constant 0 : i32
    %c0_i32_1 = arith.constant 0 : i32
    return %c0_i32, %c0_i32_0 : i32, i32
  }
  func.func @transform_3(%arg0: i32) -> (i32, i32) {
    %c0_i32 = arith.constant 0 : i32
    %c0_i32_0 = arith.constant 0 : i32
    %c0_i32_1 = arith.constant 0 : i32
    return %c0_i32, %c0_i32_0 : i32, i32
  }
  func.func @transform_4(%arg0: i32) -> (i32, i32) {
    %c0_i32 = arith.constant 0 : i32
    %c0_i32_0 = arith.constant 0 : i32
    %c0_i32_1 = arith.constant 0 : i32
    return %c0_i32, %c0_i32_0 : i32, i32
  }
  func.func @transform_5(%arg0: i32) -> (i32, i32) {
    %c0_i32 = arith.constant 0 : i32
    %c0_i32_0 = arith.constant 0 : i32
    %c0_i32_1 = arith.constant 0 : i32
    return %c0_i32, %c0_i32_0 : i32, i32
  }
  func.func @transform_6(%arg0: i32) -> (i32, i32) {
    %c0_i32 = arith.constant 0 : i32
    %c0_i32_0 = arith.constant 0 : i32
    %c0_i32_1 = arith.constant 0 : i32
    return %c0_i32, %c0_i32_0 : i32, i32
  }
  func.func @transform_7(%arg0: i32) -> (i32, i32) {
    %c0_i32 = arith.constant 0 : i32
    %c0_i32_0 = arith.constant 0 : i32
    %c0_i32_1 = arith.constant 0 : i32
    return %c0_i32, %c0_i32_0 : i32, i32
  }
  func.func @transform_8(%arg0: i32) -> (i32, i32) {
    %c0_i32 = arith.constant 0 : i32
    %c0_i32_0 = arith.constant 0 : i32
    %c0_i32_1 = arith.constant 0 : i32
    return %c0_i32, %c0_i32_0 : i32, i32
  }
  func.func @transform_9(%arg0: i32) -> (i32, i32) {
    %c0_i32 = arith.constant 0 : i32
    %c0_i32_0 = arith.constant 0 : i32
    %c0_i32_1 = arith.constant 0 : i32
    return %c0_i32, %c0_i32_0 : i32, i32
  }
  func.func @transform_10(%arg0: i32) -> (i32, i32) {
    %c0_i32 = arith.constant 0 : i32
    %c0_i32_0 = arith.constant 0 : i32
    %c0_i32_1 = arith.constant 0 : i32
    return %c0_i32, %c0_i32_0 : i32, i32
  }
  func.func @transform_11(%arg0: i32) -> (i32, i32) {
    %c0_i32 = arith.constant 0 : i32
    %c0_i32_0 = arith.constant 0 : i32
    return %arg0, %c0_i32 : i32, i32
  }
}

</mosaic_0001>

<bundles_post_ra>
// kernel: tpu_custom_call.1
= control target key start
LH: loop header
LB: loop body
LE: loop exit
PB: predicated region body
PF: predicated region fallthrough
CT: control target
= control target key end

     0   :  { %s1999_s0 = inlined_call_operand.hbm [shape: f32[16,96], index: 0, kind: input, shape index: {}]   ;;  %s2000_s1 = inlined_call_operand.hbm [shape: f32[96,192], index: 1, kind: input, shape index: {}]   ;;  %s2001_s2 = inlined_call_operand.vmem [shape: f32[16,8], index: 2, kind: input, shape index: {}]   ;;  %s2002_s3 = inlined_call_operand.vmem [shape: f32[1,16], index: 3, kind: input, shape index: {}]   ;;  %s2003_s4 = inlined_call_operand.hbm [shape: f32[8,32], index: 4, kind: input, shape index: {}]   ;;  %s2004_s5 = inlined_call_operand.hbm [shape: f32[8,32], index: 5, kind: input, shape index: {}]   ;;  %s2005_s6 = inlined_call_operand.hbm [shape: f32[8,32], index: 6, kind: input, shape index: {}]   ;;  %s2006_s7 = inlined_call_operand.hbm [shape: f32[32,32], index: 7, kind: input, shape index: {}]   ;;  %s2007_s8 = inlined_call_operand.hbm [shape: f32[1,32], index: 8, kind: input, shape index: {}]   ;;  %s2008_s9 = inlined_call_operand.hbm [shape: f32[1,32], index: 9, kind: input, shape index: {}]   ;;  %s2009_s10 = inlined_call_operand.vmem [shape: f32[32,32], index: 10, kind: input, shape index: {}]   ;;  %s2010_s11 = inlined_call_operand.hbm [shape: f32[16,32], index: 11, kind: output, shape index: {}]  }
   0x1   :  { %2011 = sst [smem:[#allocation23_spill]] %s2000_s1 }
   0x2   :  { %2012 = sst [smem:[#allocation24_spill]] %s2003_s4 }
   0x3   :  { %2013 = sst [smem:[#allocation25_spill]] %s2004_s5 }
   0x4   :  { %2014 = sst [smem:[#allocation26_spill]] %s2005_s6 }
   0x5   :  { %2015 = sst [smem:[#allocation27_spill]] %s2006_s7 }
   0x6   :  { %16 = vsyncpa [#allocation3], 0 }
   0x7   :  { %18 = vsyncpa [#allocation3 + $0x1], 0 }
   0x8   :  { %19 = vsyncpa [#allocation6], 0 }
   0x9   :  { %20 = vsyncpa [#allocation9], 0 }
   0xa   :  { %21 = vsyncpa [#allocation12], 0 }
   0xb   :  { %22 = vsyncpa [#allocation15], 0 }
   0xc   :  { %23 = vsyncpa [#allocation4], 0 }
   0xd   :  { %25 = vsyncpa [#allocation4 + $0x1], 0  ;;  %s1735_s17 = smov 0   ;;  %s1737_s18 = smov 0  }
   0xe   :  { %s1739_s19 = smov 0   ;;  %s1741_s20 = smov 0  }
   0xf LB: > { %s2016_s1 = sld [smem:[#allocation23_spill]]  ;;  %s1759_s24 = sadd.s32 4294967295, %s1657_s20   ;;  %s1657_s20 = sphi %s1741_s20, %s2031_s20   ;;  %s1653_s19 = sphi %s1739_s19, %s2030_s19   ;;  %s1649_s18 = sphi %s1737_s18, %s2029_s18   ;;  %s1645_s17 = sphi %s1735_s17, %s2028_s17  }
  0x10   : > { %p1145_p0 = scmp.ge.s32.totalorder %s1657_s20, 1  ;;  %p52_p1 = scmp.eq.s32.totalorder %s1759_s24, 0 }
  0x11   : > { %p298_p2 = scmp.lt.s32.totalorder %s1657_s20, 3  ;;  %s1659_s26 = smov [#allocation5]  }
  0x12   : > { %s311_s27 = sshll.u32 %s1659_s26, 4  ;;  %s2018_s5 = sld [smem:[#allocation25_spill]]  ;;  %s312_s27 = int_to_ptr.vmem [resolvable:$true] %s311_s27 }
  0x13   : > { %p1764_p3 = pnand %p1145_p0, %p298_p2  ;;  %s2020_s7 = sld [smem:[#allocation27_spill]] }
  0x14   : > { %s1660_s16 = smov [#allocation8]   ;;  %s1661_s22 = smov 256  }
  0x15   : > { %s309_s23 = sshll.u32 %s2016_s1, 4  ;;  %p1219_p4 = pneg %p1764_p3  ;;  %s310_s23 = int_to_ptr.hbm [resolvable:$true] %s309_s23 }
  0x16   : > { %s344_s21 = sshll.u32 %s1660_s16, 4  ;;  %s1662_s26 = smov 16   ;;  %s345_s21 = int_to_ptr.vmem [resolvable:$true] %s344_s21 }
  0x17   : > { %p1776_p6 = pnand %p1219_p4, %p52_p1  ;;  %s1663_s28 = smov [#allocation11]  }
  0x18   : > { %s342_s30 = sshll.u32 %s2018_s5, 4  ;;  %s367_s29 = sshll.u32 %s1663_s28, 4  ;;  %s343_s30 = int_to_ptr.hbm [resolvable:$true] %s342_s30  ;;  %s368_s29 = int_to_ptr.vmem [resolvable:$true] %s367_s29 }
  0x19   : > { %s365_s15 = sshll.u32 %s2020_s7, 4  ;;  %s2021_s4 = sld [smem:[#allocation24_spill]]  ;;  %s366_s15 = int_to_ptr.hbm [resolvable:$true] %s365_s15 }
  0x1a   : > { %1222 = dma.hbm_to_vmem [thread:$0]  (!%p1776_p6), %s310_s23, 3072, %s312_s27, [#allocation6], %s1661_s22, %s1661_s22, %s1662_s26  }
  0x1b   : > { %1228 = dma.hbm_to_vmem [thread:$0]  (!%p1776_p6), %s343_s30, 128, %s345_s21, [#allocation9]  }
  0x1c   : > { %s1664_s14 = smov 128   ;;  %s1665_s7 = smov 8  }
  0x1d   : > { %1234 = dma.hbm_to_vmem [thread:$0]  (!%p1776_p6), %s366_s15, 512, %s368_s29, [#allocation12], %s1664_s14, %s1664_s14, %s1665_s7  }
  0x1e   : > { %s1666_s16 = smov [#allocation7]   ;;  %s2022_s6 = sld [smem:[#allocation26_spill]] }
  0x1f   : > { %s330_s13 = sshll.u32 %s2021_s4, 4  ;;  %s332_s23 = sshll.u32 %s1666_s16, 4  ;;  %s331_s13 = int_to_ptr.hbm [resolvable:$true] %s330_s13  ;;  %s333_s23 = int_to_ptr.vmem [resolvable:$true] %s332_s23 }
  0x20   : > { %1225 = dma.hbm_to_vmem [thread:$0]  (!%p1776_p6), %s331_s13, 128, %s333_s23, [#allocation6]  }
  0x21   : > { %s380_s5 = sshll.u32 %s2007_s8, 4  ;;  %s1667_s26 = smov [#allocation10]   ;;  %s381_s5 = int_to_ptr.hbm [resolvable:$true] %s380_s5 }
  0x22   : > { %s356_s7 = sshll.u32 %s1667_s26, 4  ;;  %s1668_s15 = smov [#allocation13]   ;;  %s357_s7 = int_to_ptr.vmem [resolvable:$true] %s356_s7 }
  0x23   : > { %s382_s28 = sshll.u32 %s1668_s15, 4  ;;  %s392_s14 = sshll.u32 %s2008_s9, 4  ;;  %s383_s28 = int_to_ptr.vmem [resolvable:$true] %s382_s28  ;;  %s393_s14 = int_to_ptr.hbm [resolvable:$true] %s392_s14 }
  0x24   : > { %s354_s30 = sshll.u32 %s2022_s6, 4  ;;  %s1669_s16 = smov [#allocation14]   ;;  %s355_s30 = int_to_ptr.hbm [resolvable:$true] %s354_s30 }
  0x25   : > { %1231 = dma.hbm_to_vmem [thread:$0]  (!%p1776_p6), %s355_s30, 128, %s357_s7, [#allocation9]  }
  0x26   : > { %1237 = dma.hbm_to_vmem [thread:$0]  (!%p1776_p6), %s381_s5, 16, %s383_s28, [#allocation12]  }
  0x27   : > { %s394_s23 = sshll.u32 %s1669_s16, 4  ;;  %s1144_s27 = sadd.s32 4294967294, %s1657_s20   ;;  %s395_s23 = int_to_ptr.vmem [resolvable:$true] %s394_s23 }
  0x28   : > { %1240 = dma.hbm_to_vmem [thread:$0]  (!%p1776_p6), %s393_s14, 16, %s395_s23, [#allocation15]  }
  0x29   : > { %s1811_s22 = sadd.s32 1, %s1657_s20   ;;  %s38_s30 = sadd.s32 1, %s1653_s19 }
  0x2a   : > { %s35_s21 = ssub.s32 %s1657_s20, %s1811_s22  ;;  %p45_p7 = scmp.ne.s32.totalorder %s1653_s19, %s1649_s18 }
  0x2b   : > { %p36_p8 = scmp.eq.s32.totalorder %s35_s21, 0  ;;  %p46_p9 = scmp.eq.s32.totalorder %s1657_s20, 0 }
  0x2c   : > { %p51_p10 = scmp.ne.s32.totalorder %s1649_s18, %s1645_s17  ;;  %p285_p11 = scmp.eq.s32.totalorder %s1759_s24, 1 }
  0x2d   : > { %s1823_s1 = scalar_select %p36_p8, %s1653_s19, %s38_s30  }
  0x2e   : > { %p1827_p12 = por %p52_p1, %p51_p10  ;;  %p1831_p13 = por %p285_p11, %p45_p7 }
  0x2f   : > { %p291_p0 = scmp.eq.s32.totalorder %s1144_s27, 1  ;;  %p47_p2 = por %p46_p9, %p45_p7 }
  0x30   : > { %s408_s26 = sand.u32 1, %s1653_s19   ;;  %p1256_p6 = scmp.lt.s32.totalorder %s1657_s20, 2 }
  0x31   : > { %p1836_p4 = por %p291_p0, %p51_p10  ;;  %s1154_s15 = sshll.u32 %s408_s26, 3 }
  0x32   : > { %s1155_s28 = sshll.u32 %s1657_s20, 3  ;;  %s412_s23 = scalar_lea.vmem [#allocation2], %s1154_s15 }
  0x33   : > { %s416_s14 = scalar_lea.hbm %s1999_s0, %s1155_s28  ;;  %s420_s30 = sshll.u32 %s412_s23, 4  ;;  %s421_s30 = int_to_ptr.vmem [resolvable:$true] %s420_s30 }
  0x34   : > { %s418_s16 = sshll.u32 %s416_s14, 4  ;;  %p1845_p8 = pnand %p1256_p6, %p47_p2  ;;  %s419_s16 = int_to_ptr.hbm [resolvable:$true] %s418_s16 }
  0x35   : > { %s409_s21 = scalar_lea.sflag [#allocation3], %s408_s26  ;;  %s1545_s4 = sshra.s32 %s419_s16, 4  ;;  %s1546_s4 = int_to_ptr.hbm [resolvable:$true] %s1545_s4 }
  0x36   : > { %s1547_s6 = scalar_lea.hbm %s1546_s4, 8  ;;  %p1549_p9 = pneg %p1845_p8 }
  0x37   : > { %p1548_p7 = scmp.ne.s32.totalorder %s1546_s4, %s1547_s6  ;;  %s1552_s15 = scalar_lea.hbm %s1999_s0, 16 }
  0x38   : > { %p1553_p0 = scmp.lt.s32.totalorder %s1546_s4, %s1999_s0  ;;  %p1554_p2 = scmp.lt.s32.totalorder %s1552_s15, %s1547_s6 }
  0x39   : > { %p1550_p10 = pnand %p1549_p9, %p1548_p7 }
  0x3a   : > { %p1555_p6 = por %p1554_p2, %p1553_p0 }
  0x3b   : > { %p1551_p11 = pneg %p1550_p10 }
  0x3d   : > { %p1556_p5 = pnand %p1555_p6, %p1551_p11 }
  0x3f   : > { %1559 = shalt.err (!%p1556_p5)
}
  0x40   : > { %1244 = dma.hbm_to_vmem [thread:$0]  (!%p1845_p8), %s419_s16, 128, %s421_s30, %s409_s21  }
  0x41   : > { %429 = sbr.rel (%p1764_p3) target bundleno = 2033 (0x7f1), region = 64  ;;  %s1862_s26 = sand.u32 (!%p1764_p3), 1, %s1649_s18  }
  0x42   : > { %s1157_s23 = sshll.u32 (!%p1764_p3), %s1862_s26, 3  ;;  %s432_s28 = scalar_lea.sflag (!%p1764_p3), [#allocation3], %s1862_s26 }
  0x43   : > { %s1868_s4 = scalar_lea.vmem (!%p1764_p3), [#allocation2], %s1157_s23 }
  0x46   : > { %1620 = dma.done.wait (%p1827_p12), %s432_s28, 128  }
  0x47   : > { %1622 = vsyncadd (%p1827_p12), %s432_s28, 4294967168 }
  0x48   : > { %1624 = dma.done.wait (%p52_p1), [#allocation6], 3200  }
  0x49   : > { %1626 = vsyncadd (%p52_p1), [#allocation6], 4294964096 }
  0x4a   : > { %1628 = dma.done.wait (%p52_p1), [#allocation9], 256  }
  0x4b   : > { %1630 = vsyncadd (%p52_p1), [#allocation9], 4294967040 }
  0x4c   : > { %1632 = dma.done.wait (%p52_p1), [#allocation12], 528  }
  0x4d   : > { %1634 = vsyncadd (%p52_p1), [#allocation12], 4294966768 }
  0x4e   : > { %1636 = dma.done.wait (%p52_p1), [#allocation15], 16  }
  0x4f   : > { %1638 = vsyncadd (%p52_p1), [#allocation15], 4294967280  ;;  %v533_v0 = vld [vmem:[#allocation5 + $0xb0] sm:$0xff]  ;;  %v531_v1 = vld [vmem:[#allocation5 + $0xa0] sm:$0xff]  ;;  %s1670_s6 = smov 96   ;;  %s1671_s25 = smov 32  }
  0x50   : > { %543 = vmatpush.msra.mxu0 %v533_v0  ;;  %v529_v2 = vld [vmem:[#allocation5 + $0x90] sm:$0xff]  ;;  %v527_v3 = vld [vmem:[#allocation5 + $0x80] sm:$0xff]  ;;  %v580_v4 = vld [vmem:[#allocation8] sm:$0xff]  ;;  %s1672_s12 = smov 64   ;;  %vm535_vm0 = vcmask 785408   ;;  %s1673_s16 = smov 112  }
  0x51   : > { %597 = vrot.lane.b32.xlu0 %v580_v4, %s1670_s6  ;;  %v525_v5 = vld [vmem:[#allocation5 + $0x70] sm:$0xff]  ;;  %583 = vrot.lane.b32.xlu2 %v580_v4, %s1671_s25  ;;  %v523_v6 = vld [vmem:[#allocation5 + $0x60] sm:$0xff]  ;;  %vm614_vm1 = vcmask 64512   ;;  %v607_v29 = vld [vmem:[%s2001_s2 + $0x8] sm:$0xff]  ;;  %vm667_vm2 = vcmask 130048   ;;  %s1674_s14 = smov 16  }
  0x52   : > { %544 = vmatpush.msra.mxu0 %v531_v1  ;;  %v521_v7 = vld [vmem:[#allocation5 + $0x50] sm:$0xff]  ;;  %v579_v8 = vld [vmem:[#allocation7] sm:$0xff]  ;;  %v534_v32 = vld [vmem:[#allocation5 + $0xb8] sm:$0xff]  ;;  %vm866_vm11 = vcmask 261120   ;;  %s1184_s29 = sshll.u32 %s1759_s24, 3  ;;  %s509_s28 = scalar_lea.vmem [#allocation16], %s1157_s23 }
  0x53   : > { %v519_v9 = vld [vmem:[#allocation5 + $0x40] sm:$0xff]  ;;  %v517_v10 = vld [vmem:[#allocation5 + $0x30] sm:$0xff]  ;;  %v532_v33 = vld [vmem:[#allocation5 + $0xa8] sm:$0xff]  ;;  %563 = vmatpush.msra.mxu1 %v534_v32 }
  0x54   : > { %545 = vmatpush.msra.mxu0 %v529_v2  ;;  %v515_v11 = vld [vmem:[#allocation5 + $0x20] sm:$0xff]  ;;  %v513_v12 = vld [vmem:[#allocation5 + $0x10] sm:$0xff]  ;;  %v530_v34 = vld [vmem:[#allocation5 + $0x98] sm:$0xff] }
  0x55   : > { %v511_v13 = vld [vmem:[#allocation5] sm:$0xff]  ;;  %v1893_v14 = vld [vmem:[%s1868_s4] sm:$0xff]  ;;  %564 = vmatpush.msra.mxu1 %v532_v33  ;;  %v528_v35 = vld [vmem:[#allocation5 + $0x88] sm:$0xff]  ;;  %s1004_s4 = sshll.u32 %s509_s28, 4  ;;  %s1005_s4 = int_to_ptr.vmem [resolvable:$true] %s1004_s4 }
  0x56   : > { %546 = vmatpush.msra.mxu0 %v527_v3  ;;  %v606_v27 = vld [vmem:[%s2001_s2] sm:$0xff]  ;;  %v526_v36 = vld [vmem:[#allocation5 + $0x78] sm:$0xff]  ;;  %v524_v37 = vld [vmem:[#allocation5 + $0x68] sm:$0xff] }
  0x57   : > { %565 = vmatpush.msra.mxu1 %v530_v34  ;;  %v522_v41 = vld [vmem:[#allocation5 + $0x58] sm:$0xff]  ;;  %v520_v42 = vld [vmem:[#allocation5 + $0x48] sm:$0xff]  ;;  %v609_v47 = vld [vmem:[#allocation10] sm:$0xff] }
  0x58   : > { %547 = vmatpush.msra.mxu0 %v525_v5  ;;  %v518_v43 = vld [vmem:[#allocation5 + $0x38] sm:$0xff]  ;;  %v516_v44 = vld [vmem:[#allocation5 + $0x28] sm:$0xff]  ;;  %v1924_v50 = vld [vmem:[%s2002_s3] ss:$0 sm:$0xff] }
  0x59   : > { %593 = vrot.lane.b32.xlu0 %v579_v8, %s1672_s12  ;;  %566 = vmatpush.msra.mxu1 %v528_v35  ;;  %v514_v45 = vld [vmem:[#allocation5 + $0x18] sm:$0xff]  ;;  %v512_v46 = vld [vmem:[#allocation5 + $0x8] sm:$0xff] }
  0x5a   : > { %548 = vmatpush.msra.mxu0 %v523_v6 }
  0x5b   : > { %567 = vmatpush.msra.mxu1 %v526_v36 }
  0x5c   : > { %549 = vmatpush.msra.mxu0 %v521_v7 }
  0x5d   : > { %568 = vmatpush.msra.mxu1 %v524_v37 }
  0x5e   : > { %550 = vmatpush.msra.mxu0 %v519_v9 }
  0x5f   : > { %569 = vmatpush.msra.mxu1 %v522_v41 }
  0x60   : > { %551 = vmatpush.msra.mxu0 %v517_v10 }
  0x61   : > { %570 = vmatpush.msra.mxu1 %v520_v42 }
  0x62   : > { %552 = vmatpush.msra.mxu0 %v515_v11 }
  0x63   : > { %571 = vmatpush.msra.mxu1 %v518_v43 }
  0x64   : > { %553 = vmatpush.msra.mxu0 %v513_v12 }
  0x65   : > { %572 = vmatpush.msra.mxu1 %v516_v44 }
  0x66   : > { %554 = vmatpush.msra.mxu0 %v511_v13 }
  0x67   : > { %1166 = vmatmul.msk.f32.vlgmr.msra.gmra.mxu0 %vm535_vm0, %v1893_v14  ;;  %573 = vmatpush.msra.mxu1 %v514_v45  ;;  %v865_v45 = vld [vmem:[#allocation11 + $0x18] sm:$0xff] }
  0x68   : > { %882 = vmatpush.msrb.mxu0 %v865_v45 }
  0x69   : > { %574 = vmatpush.msra.mxu1 %v512_v46  ;;  %v864_v46 = vld [vmem:[#allocation11 + $0x10] sm:$0xff] }
  0x6a   : > { %1167 = vmatmul.msk.f32.vlgmr.msra.gmra.mxu1 %vm535_vm0, %v1893_v14  ;;  %883 = vmatpush.msrb.mxu0 %v864_v46 }
  0x6b   : > { %907 = vmatpush.msrb.mxu1 %v865_v45 }
  0x6d   : > { %908 = vmatpush.msrb.mxu1 %v864_v46 }
  0xab   : > { %v584_v15 = vpop.permute.xlu2 %583 }
  0xc3   : > { %v598_v16 = vpop.permute.xlu0 %597 }
  0xcb   : > { %v594_v23 = vpop.permute.xlu0 %593 }
  0xe4   : > { %v556_v17 = vpop.f32.mrf.mxu0 }
  0xe5   : > { %v600_v18 = vmul.f32 %v598_v16, %v556_v17  ;;  %v586_v19 = vmul.f32 %v584_v15, %v556_v17  ;;  %v581_v20 = vmul.f32 %v579_v8, %v556_v17  ;;  %v596_v24 = vmul.f32 %v594_v23, %v556_v17 }
  0xe7   : > { %602 = vrot.lane.b32.xlu1 %v600_v18, %s1670_s6  ;;  %588 = vrot.lane.b32.xlu2 %v586_v19, %s1670_s6  ;;  %v1928_v57 = vpop.f32.mrf.mxu1 }
  0xe8   : > { %659 = vmatpush.msra.mxu3 %v1928_v57 }
  0xe9   : > { %1170 = vmatmul.msk.f32.vlgmr.msra.gmra.mxu3 %vm614_vm1, %v606_v27 }
  0xf1   : > { %1171 = vmatmul.msk.f32.gmra.mxu3 %vm614_vm1, %v607_v29 }
 0x141   : > { %v589_v21 = vpop.permute.xlu2 %588 }
 0x142   : > { %v591_v22 = vadd.f32 %v589_v21, %v581_v20 }
 0x144   : > { %756 = vrot.lane.b32.xlu2 %v591_v22, %s1673_s16  ;;  %v668_v40 = vsel %vm667_vm2, %v591_v22, 0.0 }
 0x14c   : > { %794 = vrot.lane.b32.xlu2 %v609_v47, %s1673_s16 }
 0x159   : > { %v603_v25 = vpop.permute.xlu1 %602 }
 0x15a   : > { %v605_v26 = vadd.f32 %v603_v25, %v596_v24 }
 0x15c   : > { %611 = vrot.lane.b32.xlu1 %v605_v26, %s1672_s12 }
 0x16c   : > { %v661_v6 = vpop.f32.mrf.mxu3 }
 0x174   : > { %v664_v7 = vpop.f32.mrf.mxu3 }
 0x175   : > { %v1313_v8 = vpack.i.bf16 %v661_v6, %v664_v7  ;;  %750 = vmatpush.msrb.mxu3 %v664_v7 }
 0x177   : > { %751 = vmatpush.msrb.mxu3 %v661_v6 }
 0x19e   : > { %v757_v38 = vpop.permute.xlu2 %756 }
 0x19f   : > { %v759_v39 = vsel %vm667_vm2, %v757_v38, 0.0 }
 0x1a6   : > { %v795_v61 = vpop.permute.xlu2 %794 }
 0x1ce   : > { %v612_v28 = vpop.permute.xlu1 %611 }
 0x1cf   : > { %636 = vmatpush.msra.mxu2 %v612_v28 }
 0x1d0   : > { %1168 = vmatmul.msk.f32.vlgmr.msra.gmra.mxu2 %vm614_vm1, %v606_v27 }
 0x1d8   : > { %1169 = vmatmul.msk.f32.gmra.mxu2 %vm614_vm1, %v607_v29 }
 0x253   : > { %v638_v30 = vpop.f32.mrf.mxu2 }
 0x254   : > { %763 = vrot.lane.b32.xlu1 %v638_v30, %s1673_s16 }
 0x25b   : > { %v641_v31 = vpop.f32.mrf.mxu2 }
 0x25c   : > { %765 = vrot.lane.b32.xlu0 %v641_v31, %s1673_s16  ;;  %1172 = vmatpush.xpose.msk.msrb.mxu2 %vm667_vm2, %v641_v31 }
 0x260   : > { %1173 = vmatpush.xpose.msk.msrb.mxu2 %vm667_vm2, %v638_v30 }
 0x263   : > { %1174 = vmatmul.msk.f32.vlgmr.msrb.gmra.mxu2 %vm667_vm2, %v591_v22 }
 0x27e   : > { %760 = vadd.xlane.f32.xlu1 %v759_v39 }
 0x286   : > { %669 = vadd.xlane.f32.xlu0 %v668_v40 }
 0x2c6   : > { %v764_v49 = vpop.permute.xlu1 %763 }
 0x2ce   : > { %v766_v48 = vpop.permute.xlu0 %765 }
 0x2cf   : > { %1176 = vmatpush.xpose.msk.msra.mxu2 %vm667_vm2, %v766_v48 }
 0x2d3   : > { %1177 = vmatpush.xpose.msk.msra.mxu2 %vm667_vm2, %v764_v49 }
 0x2d6   : > { %1178 = vmatmul.msk.f32.vlgmr.msra.gmra.mxu2 %vm667_vm2, %v757_v38 }
 0x2e6   : > { %v701_v53 = vpop.f32.mrf.mxu2 }
 0x2f1   : > { %v761_v58 = vpop.xlane.xlu1 %760 }
 0x2f2   : > { %v762_v59 = vmul.f32 %v1924_v50, %v761_v58 }
 0x2f9   : > { %v670_v51 = vpop.xlane.xlu0 %669 }
 0x2fa   : > { %v674_v52 = vmul.f32 %v1924_v50, %v670_v51 }
 0x2fc   : > { %v702_v54 = vadd.f32 %v701_v53, %v674_v52  ;;  %v862_v53 = vld [vmem:[#allocation11] sm:$0xff] }
 0x2fe   : > { %v704_v55 = vmul.f32 %v702_v54, %v609_v47  ;;  %v863_v47 = vld [vmem:[#allocation11 + $0x8] sm:$0xff] }
 0x2ff   : > { %884 = vmatpush.msrb.mxu0 %v863_v47  ;;  %909 = vmatpush.msrb.mxu1 %v863_v47 }
 0x300   : > { %v705_v56 = vsel %vm667_vm2, %v704_v55, -inf }
 0x301   : > { %706 = vmax.xlane.f32.xlu2 %v705_v56  ;;  %885 = vmatpush.msrb.mxu0 %v862_v53 }
 0x302   : > { %910 = vmatpush.msrb.mxu1 %v862_v53 }
 0x359   : > { %v790_v60 = vpop.f32.mrf.mxu2 }
 0x35a   : > { %v791_v62 = vadd.f32 %v790_v60, %v762_v59 }
 0x35c   : > { %v797_v63 = vmul.f32 %v795_v61, %v791_v62 }
 0x35e   : > { %v798_v0 = vsel %vm667_vm2, %v797_v63, -inf }
 0x35f   : > { %799 = vmax.xlane.f32.xlu0 %v798_v0 }
 0x373   : > { %1314 = vrot.lane.b32.xlu0 %v1313_v8, %s1673_s16  ;;  %v1320_v8 = vld [vmem:[#allocation14] ss:$0 sm:$0xff]  ;;  %s992_s16 = scalar_lea.sflag [#allocation4], %s1862_s26 }
 0x374   : > { %v707_v1 = vpop.xlane.xlu2 %706 }
 0x375   : > { %v708_v2 = vsub.f32 %v704_v55, %v707_v1 }
 0x377   : > { %v709_v3 = vmul.f32 1.442695, %v708_v2 }
 0x379   : > { %1321 = vpow2.f32 %v709_v3 }
 0x37f   : > { %v1322_v4 = vpop.eup %1321 }
 0x380   : > { %v711_v5 = vsel %vm667_vm2, %v1322_v4, 0.0 }
 0x381   : > { %712 = vadd.xlane.f32.xlu1 %v711_v5  ;;  %v1319_v5 = vld [vmem:[#allocation13] ss:$0 sm:$0xff] }
 0x3d2   : > { %v800_v9 = vpop.xlane.xlu0 %799 }
 0x3d3   : > { %v801_v10 = vsub.f32 %v797_v63, %v800_v9 }
 0x3d5   : > { %v802_v11 = vmul.f32 1.442695, %v801_v10 }
 0x3d7   : > { %1323 = vpow2.f32 %v802_v11 }
 0x3dd   : > { %v1324_v12 = vpop.eup %1323 }
 0x3de   : > { %v804_v13 = vsel %vm667_vm2, %v1324_v12, 0.0 }
 0x3df   : > { %805 = vadd.xlane.f32.xlu2 %v804_v13 }
 0x3e5   : > { %v1315_v28 = vpop.permute.xlu0 %1314 }
 0x3e6   : > { %v1316_v29 = vunpack.i.l.bf16 %v1315_v28  ;;  %v1317_v30 = vunpack.i.h.bf16 %v1315_v28 }
 0x3e8   : > { %851 = vmatpush.msra.mxu3 %v1316_v29 }
 0x3ea   : > { %852 = vmatpush.msra.mxu3 %v1317_v30 }
 0x3f4   : > { %v713_v14 = vpop.xlane.xlu1 %712 }
 0x3f5   : > { %1325 = vrcp.f32 %v713_v14  ;;  %v725_v18 = vand.u32 2147483648, %v713_v14  ;;  %v723_v20 = vand.u32 2147483647, %v713_v14  ;;  %vm719_vm4 = vweird.f32 %v713_v14 }
 0x3f7   : > { %v726_v22 = vor.u32 1.1754944e-38, %v725_v18  ;;  %vm724_vm6 = vcmp.eq.f32.partialorder %v723_v20, 8.507059e+37 }
 0x3fb   : > { %v1326_v15 = vpop.eup %1325 }
 0x3fc   : > { %v715_v16 = vmul.f32 %v1326_v15, %v713_v14  ;;  %vm720_vm3 = vweird.f32 %v1326_v15  ;;  %v964_v14 = vld [vmem:[%s2009_s10 + $0x18] sm:$0xff] }
 0x3fd   : > { %vm721_vm5 = vmor %vm719_vm4, %vm720_vm3  ;;  %982 = vmatpush.msrb.mxu2 %v964_v14 }
 0x3fe   : > { %v716_v17 = vsub.f32 1.0, %v715_v16 }
 0x400   : > { %v717_v19 = vmul.f32 %v1326_v15, %v716_v17  ;;  %v962_v17 = vld [vmem:[%s2009_s10 + $0x8] sm:$0xff] }
 0x402   : > { %v718_v21 = vadd.f32 %v1326_v15, %v717_v19 }
 0x404   : > { %v722_v23 = vsel %vm721_vm5, %v1326_v15, %v718_v21  ;;  %v963_v15 = vld [vmem:[%s2009_s10 + $0x10] sm:$0xff] }
 0x405   : > { %v727_v24 = vsel %vm724_vm6, %v726_v22, %v722_v23  ;;  %983 = vmatpush.msrb.mxu2 %v963_v15 }
 0x406   : > { %v728_v25 = vmul.f32 %v1322_v4, %v727_v24 }
 0x407   : > { %984 = vmatpush.msrb.mxu2 %v962_v17 }
 0x408   : > { %1175 = vmatmul.msk.f32.vlgmr.msrb.gmra.mxu3 %vm667_vm2, %v728_v25  ;;  %v729_v26 = vmul.f32 %v1924_v50, %v728_v25 }
 0x40a   : > { %v730_v27 = vsel %vm667_vm2, %v729_v26, 0.0 }
 0x40b   : > { %731 = vadd.xlane.f32.xlu2 %v730_v27 }
 0x452   : > { %v806_v31 = vpop.xlane.xlu2 %805 }
 0x453   : > { %1327 = vrcp.f32 %v806_v31  ;;  %v818_v35 = vand.u32 2147483648, %v806_v31  ;;  %v816_v37 = vand.u32 2147483647, %v806_v31  ;;  %vm812_vm8 = vweird.f32 %v806_v31 }
 0x455   : > { %v819_v39 = vor.u32 1.1754944e-38, %v818_v35  ;;  %vm817_vm10 = vcmp.eq.f32.partialorder %v816_v37, 8.507059e+37 }
 0x459   : > { %v1328_v32 = vpop.eup %1327 }
 0x45a   : > { %v808_v33 = vmul.f32 %v1328_v32, %v806_v31  ;;  %vm813_vm7 = vweird.f32 %v1328_v32 }
 0x45b   : > { %vm814_vm9 = vmor %vm812_vm8, %vm813_vm7 }
 0x45c   : > { %v809_v34 = vsub.f32 1.0, %v808_v33 }
 0x45e   : > { %v810_v36 = vmul.f32 %v1328_v32, %v809_v34 }
 0x460   : > { %v811_v38 = vadd.f32 %v1328_v32, %v810_v36 }
 0x462   : > { %v815_v40 = vsel %vm814_vm9, %v1328_v32, %v811_v38 }
 0x463   : > { %v820_v41 = vsel %vm817_vm10, %v819_v39, %v815_v40 }
 0x464   : > { %v821_v42 = vmul.f32 %v1324_v12, %v820_v41 }
 0x466   : > { %1179 = vmatmul.msk.f32.vlgmr.msra.gmra.mxu3 %vm667_vm2, %v821_v42  ;;  %v822_v43 = vmul.f32 %v1924_v50, %v821_v42 }
 0x468   : > { %v823_v44 = vsel %vm667_vm2, %v822_v43, 0.0 }
 0x469   : > { %824 = vadd.xlane.f32.xlu1 %v823_v44 }
 0x47e   : > { %v732_v50 = vpop.xlane.xlu2 %731 }
 0x48b   : > { %v753_v48 = vpop.f32.mrf.mxu3 }
 0x48c   : > { %v754_v54 = vadd.f32 %v753_v48, %v732_v50 }
 0x4dc   : > { %v825_v49 = vpop.xlane.xlu1 %824 }
 0x4e9   : > { %v854_v51 = vpop.f32.mrf.mxu3 }
 0x4ea   : > { %v855_v52 = vadd.f32 %v854_v51, %v825_v49 }
 0x4ec   : > { %858 = vrot.lane.b32.xlu1 %v855_v52, %s1674_s14  ;;  %s1002_s14 = scalar_lea.hbm %s2010_s11, %s1184_s29 }
 0x4ed   : > { %s1006_s12 = sshll.u32 %s1002_s14, 4  ;;  %s1007_s12 = int_to_ptr.hbm [resolvable:$true] %s1006_s12 }
 0x55e   : > { %v859_v55 = vpop.permute.xlu1 %858 }
 0x55f   : > { %v861_v56 = vsel %vm667_vm2, %v754_v54, %v859_v55 }
 0x560   : > { %1180 = vmatmul.msk.f32.vlgmr.msrb.gmra.mxu0 %vm866_vm11, %v861_v56 }
 0x5dd   : > { %v887_v58 = vpop.f32.mrf.mxu0 }
 0x5de   : > { %v890_v59 = vsub.f32 %v861_v56, %v887_v58 }
 0x5e0   : > { %v891_v60 = vmul.f32 %v890_v59, %v890_v59 }
 0x5e2   : > { %1181 = vmatmul.msk.f32.vlgmr.msrb.gmra.mxu1 %vm866_vm11, %v891_v60 }
 0x65f   : > { %v912_v61 = vpop.f32.mrf.mxu1 }
 0x660   : > { %v913_v62 = vadd.f32 1e-05, %v912_v61 }
 0x662   : > { %1329 = vrsqrt.f32 %v913_v62  ;;  %vm921_vm13 = vweird.f32 %v913_v62 }
 0x668   : > { %v1330_v63 = vpop.eup %1329 }
 0x669   : > { %v916_v0 = vmul.f32 %v1330_v63, %v913_v62  ;;  %vm922_vm12 = vweird.f32 %v1330_v63 }
 0x66a   : > { %vm923_vm14 = vmor %vm921_vm13, %vm922_vm12 }
 0x66b   : > { %v917_v1 = vmul.f32 %v1330_v63, %v916_v0 }
 0x66d   : > { %v918_v2 = vmul.f32 0.5, %v917_v1 }
 0x66f   : > { %v919_v3 = vsub.f32 1.5, %v918_v2 }
 0x671   : > { %v920_v4 = vmul.f32 %v1330_v63, %v919_v3 }
 0x673   : > { %v924_v6 = vsel %vm923_vm14, %v1330_v63, %v920_v4 }
 0x674   : > { %v925_v7 = vmul.f32 %v924_v6, %v890_v59 }
 0x676   : > { %v930_v9 = vmul.f32 %v1319_v5, %v925_v7 }
 0x678   : > { %v935_v10 = vadd.f32 %v1320_v8, %v930_v9 }
 0x67a   : > { %937 = vrot.lane.b32.xlu2 %v935_v10, %s1671_s25  ;;  %s1595_s25 = scalar_lea.hbm %s2010_s11, 16 }
 0x6d4   : > { %v938_v11 = vpop.permute.xlu2 %937 }
 0x6d5   : > { %v940_v12 = vmul.f32 %v938_v11, %v1928_v57  ;;  %v961_v57 = vld [vmem:[%s2009_s10] sm:$0xff] }
 0x6d6   : > { %985 = vmatpush.msrb.mxu2 %v961_v57 }
 0x6d7   : > { %v941_v13 = vsub.f32 0.0, %v940_v12 }
 0x6d9   : > { %v942_v16 = vmul.f32 1.442695, %v941_v13 }
 0x6db   : > { %1331 = vpow2.f32 %v942_v16 }
 0x6e1   : > { %v1332_v18 = vpop.eup %1331 }
 0x6e2   : > { %v944_v19 = vadd.f32 1.0, %v1332_v18 }
 0x6e4   : > { %1333 = vrcp.f32 %v944_v19  ;;  %v956_v23 = vand.u32 2147483648, %v944_v19  ;;  %v954_v25 = vand.u32 2147483647, %v944_v19  ;;  %vm950_vm0 = vweird.f32 %v944_v19 }
 0x6e6   : > { %v957_v27 = vor.u32 1.1754944e-38, %v956_v23  ;;  %vm955_vm2 = vcmp.eq.f32.partialorder %v954_v25, 8.507059e+37 }
 0x6ea   : > { %v1334_v20 = vpop.eup %1333 }
 0x6eb   : > { %v946_v21 = vmul.f32 %v1334_v20, %v944_v19  ;;  %vm951_vm15 = vweird.f32 %v1334_v20 }
 0x6ec   : > { %vm952_vm1 = vmor %vm950_vm0, %vm951_vm15 }
 0x6ed   : > { %v947_v22 = vsub.f32 1.0, %v946_v21 }
 0x6ef   : > { %v948_v24 = vmul.f32 %v1334_v20, %v947_v22 }
 0x6f1   : > { %v949_v26 = vadd.f32 %v1334_v20, %v948_v24 }
 0x6f3   : > { %v953_v28 = vsel %vm952_vm1, %v1334_v20, %v949_v26 }
 0x6f4   : > { %v958_v29 = vsel %vm955_vm2, %v957_v27, %v953_v28 }
 0x6f5   : > { %v960_v30 = vmul.f32 %v958_v29, %v940_v12 }
 0x6f7   : > { %966 = vrot.lane.b32.xlu0 %v960_v30, %s1670_s6  ;;  %s1589_s6 = sshra.s32 %s1007_s12, 4  ;;  %s1590_s6 = int_to_ptr.hbm [resolvable:$true] %s1589_s6 }
 0x6f8   : > { %s1591_s30 = scalar_lea.hbm %s1590_s6, 8  ;;  %p1596_p12 = scmp.lt.s32.totalorder %s1590_s6, %s2010_s11 }
 0x6f9   : > { %p1592_p1 = scmp.ne.s32.totalorder %s1590_s6, %s1591_s30  ;;  %p1597_p8 = scmp.lt.s32.totalorder %s1595_s25, %s1591_s30 }
 0x6fb   : > { %p1593_p3 = pnand %p1592_p1, %p1831_p13  ;;  %p1598_p7 = por %p1597_p8, %p1596_p12 }
 0x6fd   : > { %p1594_p5 = pneg %p1593_p3 }
 0x6ff   : > { %p1599_p9 = pnand %p1598_p7, %p1594_p5 }
 0x769   : > { %v967_v31 = vpop.permute.xlu0 %966 }
 0x76a   : > { %1182 = vmatmul.msk.f32.vlgmr.msrb.gmra.mxu2 %vm866_vm11, %v967_v31 }
 0x7ed   : > { %v987_v32 = vpop.f32.mrf.mxu2 }
 0x7ee   : > { %990 = vst.msk [vmem:[%s509_s28] sm:$0xff] %vm866_vm11, %v987_v32 }
 0x7ef   : > { %1602 = shalt.err (!%p1599_p9)
}
 0x7f0   : > { %1217 = dma.vmem_to_hbm [thread:$0]  (%p1831_p13), %s1005_s4, 128, %s1007_s12, %s992_s16  }
 0x7f1 PF: > { %s1018_s26 = sand.u32 1, %s1645_s17   ;;  %p2027_p10 = scmp.ge.s32.totalorder %s1657_s20, 2 }
 0x7f2   : > { %s1019_s29 = scalar_lea.sflag [#allocation4], %s1018_s26 }
 0x7f3   : > { %p1246_p11 = pnand %p2027_p10, %p1836_p4 }
 0x7f5   : > { %p1247_p0 = pneg %p1246_p11 }
 0x7f7   : > { %1640 = dma.done.wait (%p1247_p0), %s1019_s29, 128  }
 0x7f8   : > { %1642 = vsyncadd (%p1247_p0), %s1019_s29, 4294967168  ;;  %p28_p2 = scmp.ge.s32.totalorder %s1811_s22, 4   ;;  %s2028_s17 = smov %s1649_s18 }
 0x7f9   : > { %s2029_s18 = smov %s1653_s19  ;;  %s2030_s19 = smov %s1823_s1 }
 0x7fa   : > { %s2031_s20 = smov %s1811_s22  ;;  %30 = sbr.rel (!%p28_p2) target bundleno = 15 (0xf), region = 137 }
 0x7ff   :  { %1025 = vsyncpa [#allocation3], 1 }
 0x800   :  { %1027 = vsyncpa [#allocation3 + $0x1], 1 }
 0x801   :  { %1028 = vsyncpa [#allocation6], 1 }
 0x802   :  { %1029 = vsyncpa [#allocation9], 1 }
 0x803   :  { %1030 = vsyncpa [#allocation12], 1 }
 0x804   :  { %1031 = vsyncpa [#allocation15], 1 }
 0x805   :  { %1032 = vsyncpa [#allocation4], 1 }
 0x806   :  { %1034 = vsyncpa [#allocation4 + $0x1], 1 }

</bundles_post_ra>
